<compile_context>
chip_gen: v7x
topology: tpu7x:2x2x1
jax: 0.10.0
libtpu: 0.0.40
codegen_flags: <defaults>
</compile_context>

<pallas_src>
import functools

import jax
import jax.numpy as jnp
from jax.experimental import pallas as pl
from jax.experimental.pallas import tpu as pltpu


def _sap_kernel(rep_ref, mask_ref, w_ref, out_ref, m_sc, l_sc, acc_sc, *, seq_len):
    # rep_ref  : (nb, tb, H) block, native input dtype (f32 or bf16)
    # mask_ref : (nb, tb)    additive attention-mask block
    # w_ref    : (1, H)      projection weight in the input dtype (shared)
    # out_ref  : (nb, H)     pooled output block (resident across the T axis)
    # m_sc/l_sc/acc_sc : online-softmax accumulators, f32 VMEM scratch
    nb, tb, H = rep_ref.shape
    t = pl.program_id(1)
    t_steps = pl.num_programs(1)

    @pl.when(t == 0)
    def _init():
        m_sc[...] = jnp.full_like(m_sc, -jnp.inf)
        l_sc[...] = jnp.zeros_like(l_sc)
        acc_sc[...] = jnp.zeros_like(acc_sc)

    rep = rep_ref[...]                                         # (nb, tb, H), native dtype
    w = w_ref[...]                                             # (1, H),       native dtype

    # ---- attention logits on the MXU, lane-dense along T -------------------
    # logits[n, t] = sum_h rep[n, t, h] * w[h]   (Linear bias dropped: softmax
    # shift-invariance).  Batched (nb,1,H)@(nb,tb,H)^T matvec, f32 accumulation.
    w_b = jnp.broadcast_to(w[None], (nb, 1, H))                # tiny, once per step
    logits = jnp.einsum("nkh,nth->nkt", w_b, rep,
                        preferred_element_type=jnp.float32)[:, 0, :]   # (nb, tb) f32
    logits = logits + mask_ref[...].astype(jnp.float32)

    # Guard padded T positions when the last T block is ragged (static check).
    if seq_len % tb != 0:
        col = t * tb + jax.lax.broadcasted_iota(jnp.int32, (nb, tb), 1)
        logits = jnp.where(col < seq_len, logits, -jnp.inf)

    # ---- online softmax over the T grid axis (1 step == plain softmax) -----
    # TODO(synk): a fully -inf-masked row yields NaN here (same as the PyTorch /
    # pure-JAX reference) -- shared edge case, not handled specially.
    m_prev = m_sc[...]                                         # (nb, 1)
    m_new = jnp.maximum(m_prev, jnp.max(logits, axis=-1, keepdims=True))
    alpha = jnp.exp(m_prev - m_new)                            # (nb, 1); 0 on first step
    p = jnp.exp(logits - m_new)                                # (nb, tb), unnormalized
    l_sc[...] = alpha * l_sc[...] + jnp.sum(p, axis=-1, keepdims=True)

    # ---- weighted sum over T on the MXU (batched (nb,1,tb)@(nb,tb,H)) ------
    pv = jnp.einsum("nqt,nth->nqh", p[:, None, :].astype(rep.dtype), rep,
                    preferred_element_type=jnp.float32)[:, 0, :]        # (nb, H) f32
    acc_sc[...] = alpha * acc_sc[...] + pv
    m_sc[...] = m_new

    @pl.when(t == t_steps - 1)
    def _finalize():
        # Exact divide: pl.reciprocal(approx=True) costs ~1e-3 relative error
        # per row, which broke the f32 correctness check.
        out_ref[...] = (acc_sc[...] / l_sc[...]).astype(out_ref.dtype)


def _vmem_capacity_bytes():
    try:
        return int(pltpu.get_tpu_info().vmem_capacity_bytes)
    except Exception:
        return 64 * 1024 * 1024   # conservative: v7x per-TensorCore VMEM


def _plan_blocks(N, T, H, itemsize, rep_budget):
    """Pick (nb, tb) batch / sequence block sizes.

    BlockSpec (8,128) rule: nb must be a multiple of 8 or == N (mask/out blocks);
    tb must be == T or a multiple of 128 (mask block's last dim).  The budget
    covers the double-buffered rep stream + mask + f32 kernel temporaries.
    """
    def block_bytes(nb, tb):
        rep = 2 * nb * tb * H * itemsize        # double-buffered rep stream
        mask = 2 * nb * tb * 4                  # double-buffered mask
        tmp = 4 * nb * (3 * tb + 4 * H)         # logits/p + acc/out f32 temporaries
        return rep + mask + tmp

    min_nb = N if N <= 8 else 8
    if T <= 128 or block_bytes(min_nb, T) <= rep_budget:
        tb = T
        nb_cap = rep_budget // max(1, block_bytes(1, T))
        if N <= 8 or nb_cap >= N:
            nb = N
        else:
            nb = min(N, max(8, (nb_cap // 8) * 8))
        return int(nb), int(tb)

    # Long-sequence fallback: tile T (online softmax across the "arbitrary" axis).
    nb = min_nb
    tb = 128
    while tb + 128 < T and block_bytes(nb, tb + 128) <= rep_budget:
        tb += 128
    return int(nb), int(tb)


def self_attention_pooling(batch_rep, att_mask, weight, bias=None):
    """
    batch_rep : (N, T, H) float32 / bfloat16
    att_mask  : (N, T)    additive mask (e.g. 0 / -1e9)
    weight    : (H,)      nn.Linear(H, 1) weight, squeezed
    bias      : ()        nn.Linear(H, 1) bias (unused: softmax shift-invariance)
    returns   : (N, H)    attention-pooled representation, same dtype as batch_rep
    """
    del bias  # mathematically a no-op for the pooled output
    N, T, H = batch_rep.shape
    dtype = batch_rep.dtype
    w_row = jnp.asarray(weight, dtype).reshape(1, H)   # contract H in native dtype

    vmem_cap = _vmem_capacity_bytes()
    rep_budget = max(2 * 1024 * 1024, vmem_cap // 3)       # ~21 MiB v7x, ~42 MiB v5e/v6e
    vmem_limit = min(vmem_cap * 3 // 4, 100 * 1024 * 1024)  # 48 MiB v7x, 96 MiB v5e/v6e

    nb, tb = _plan_blocks(N, T, H, jnp.dtype(dtype).itemsize, rep_budget)
    grid = (pl.cdiv(N, nb), pl.cdiv(T, tb))

    kernel = functools.partial(_sap_kernel, seq_len=T)

    return pl.pallas_call(
        kernel,
        out_shape=jax.ShapeDtypeStruct((N, H), dtype),
        grid_spec=pltpu.PrefetchScalarGridSpec(
            num_scalar_prefetch=0,
            grid=grid,
            in_specs=[
                pl.BlockSpec((nb, tb, H), lambda n, t: (n, t, 0)),   # rep block
                pl.BlockSpec((nb, tb), lambda n, t: (n, t)),         # mask block
                pl.BlockSpec((1, H), lambda n, t: (0, 0)),           # weight (shared)
            ],
            out_specs=pl.BlockSpec((nb, H), lambda n, t: (n, 0)),    # resident over T
            scratch_shapes=[
                pltpu.VMEM((nb, 1), jnp.float32),    # m: running max
                pltpu.VMEM((nb, 1), jnp.float32),    # l: running denom
                pltpu.VMEM((nb, H), jnp.float32),    # acc: running weighted sum
            ],
        ),
        compiler_params=pltpu.CompilerParams(
            dimension_semantics=("parallel", "arbitrary"),
            vmem_limit_bytes=int(vmem_limit),
        ),
    )(batch_rep, att_mask, w_row)


def _reference(batch_rep, att_mask, weight, bias):
    # pure-JAX reference mirroring the PyTorch forward (bias included)
    att_logits = jnp.einsum("nth,h->nt", batch_rep, weight,
                            precision="highest") + bias          # (N, T)
    att_logits = att_mask + att_logits
    att_w = jax.nn.softmax(att_logits, axis=-1)[..., None]       # (N, T, 1)
    return jnp.sum(batch_rep * att_w, axis=1)                    # (N, H)


if __name__ == "__main__":
    N, T, H = 2, 8, 32

    key = jax.random.PRNGKey(0)
    k1, k2, k3 = jax.random.split(key, 3)

    batch_rep = jax.random.normal(k1, (N, T, H), dtype=jnp.float32)

    # additive mask: second sequence has its last 3 steps masked out
    mask = jnp.zeros((N, T), dtype=jnp.float32)
    mask = mask.at[1, 5:].set(-1e9)

    # deterministic "nn.Linear(H, 1)" parameters (uniform in +/- 1/sqrt(H))
    bound = 1.0 / jnp.sqrt(jnp.float32(H))
    weight = jax.random.uniform(k2, (H,), jnp.float32, -bound, bound)
    bias = jax.random.uniform(k3, (), jnp.float32, -bound, bound)

    out = self_attention_pooling(batch_rep, mask, weight, bias)
    out = jax.block_until_ready(out)

    ref = _reference(batch_rep, mask, weight, bias)
    assert out.shape == (N, H)
    assert jnp.allclose(out, ref, atol=1e-3, rtol=1e-3), (out, ref)

    print("KERNEL_OK")
</pallas_src>

<mosaic_0001>
module attributes {stable_mosaic.version = 11 : i64} {
  func.func @_sap_kernel(%arg0: i32, %arg1: i32, %arg2: memref<2x8x32xf32, #tpu.memory_space<vmem>>, %arg3: memref<2x8xf32, #tpu.memory_space<vmem>>, %arg4: memref<1x32xf32, #tpu.memory_space<vmem>>, %arg5: memref<2x32xf32, #tpu.memory_space<vmem>>, %arg6: memref<2x1xf32, #tpu.memory_space<vmem>>, %arg7: memref<2x1xf32, #tpu.memory_space<vmem>>, %arg8: memref<2x32xf32, #tpu.memory_space<vmem>>) attributes {dimension_semantics = [#tpu.dimension_semantics<parallel>, #tpu.dimension_semantics<arbitrary>], iteration_bounds = array<i64: 1, 1>, scalar_prefetch = 0 : i64, scratch_operands = 3 : i64, tpu.core_type = #tpu.core_type<tc>, window_params = [{transform_indices = @transform_0, window_bounds = array<i64: 2, 8, 32>}, {transform_indices = @transform_1, window_bounds = array<i64: 2, 8>}, {pipeline_mode = #tpu.pipeline_mode<synchronous>, transform_indices = @transform_2, window_bounds = array<i64: 1, 32>}, {transform_indices = @transform_3, window_bounds = array<i64: 2, 32>}]} {
    %c0_i32 = arith.constant 0 : i32
    %0 = arith.cmpi eq, %arg1, %c0_i32 : i32
    %1 = arith.extui %0 : i1 to i32
    %c0_i32_0 = arith.constant 0 : i32
    %2 = arith.cmpi ne, %1, %c0_i32_0 : i32
    scf.if %2 {
      %cst_24 = arith.constant 0xFF800000 : f32
      %39 = vector.broadcast %cst_24 : f32 to vector<2x1xf32>
      %c0_25 = arith.constant 0 : index
      %c0_26 = arith.constant 0 : index
      %40 = vector.load %arg6[%c0_25, %c0_26] : memref<2x1xf32, #tpu.memory_space<vmem>>, vector<2x1xf32>
      tpu.vector_store %arg6[%c0_25, %c0_26], %39 {strides = array<i32>} : memref<2x1xf32, #tpu.memory_space<vmem>>, vector<2x1xf32>,
      %cst_27 = arith.constant 0.000000e+00 : f32
      %41 = vector.broadcast %cst_27 : f32 to vector<2x1xf32>
      %c0_28 = arith.constant 0 : index
      %c0_29 = arith.constant 0 : index
      %42 = vector.load %arg7[%c0_28, %c0_29] : memref<2x1xf32, #tpu.memory_space<vmem>>, vector<2x1xf32>
      tpu.vector_store %arg7[%c0_28, %c0_29], %41 {strides = array<i32>} : memref<2x1xf32, #tpu.memory_space<vmem>>, vector<2x1xf32>,
      %cst_30 = arith.constant 0.000000e+00 : f32
      %43 = vector.broadcast %cst_30 : f32 to vector<2x32xf32>
      %c0_31 = arith.constant 0 : index
      %c0_32 = arith.constant 0 : index
      %44 = vector.load %arg8[%c0_31, %c0_32] : memref<2x32xf32, #tpu.memory_space<vmem>>, vector<2x32xf32>
      tpu.vector_store %arg8[%c0_31, %c0_32], %43 {strides = array<i32>} : memref<2x32xf32, #tpu.memory_space<vmem>>, vector<2x32xf32>,
    } else {
    }
    %c0 = arith.constant 0 : index
    %c0_1 = arith.constant 0 : index
    %c0_2 = arith.constant 0 : index
    %3 = vector.load %arg2[%c0, %c0_1, %c0_2] : memref<2x8x32xf32, #tpu.memory_space<vmem>>, vector<2x8x32xf32>
    %c0_3 = arith.constant 0 : index
    %c0_4 = arith.constant 0 : index
    %4 = vector.load %arg4[%c0_3, %c0_4] : memref<1x32xf32, #tpu.memory_space<vmem>>, vector<1x32xf32>
    %5 = vector.shape_cast %4 : vector<1x32xf32> to vector<1x1x32xf32>
    %6 = vector.shape_cast %5 : vector<1x1x32xf32> to vector<1x1x32xf32>
    %7 = vector.broadcast %6 : vector<1x1x32xf32> to vector<2x1x32xf32>
    "tpu.trace_start"() <{level = 10 : i32, message = "nkh,nth->nkt"}> : () -> ()
    %cst = arith.constant dense<0.000000e+00> : vector<2x1x8xf32>
    %8 = tpu.matmul %7, %3, %cst {dimension_numbers = #tpu.dot_dimension_numbers<[2], [2], [1], [1], [0, 0, 0, 1, 1, 1], [0], [0]>} : vector<2x1x32xf32>, vector<2x8x32xf32>, vector<2x1x8xf32> -> vector<2x1x8xf32>
    "tpu.trace_stop"() : () -> ()
    %9 = vector.shape_cast %8 : vector<2x1x8xf32> to vector<2x8xf32>
    %c0_5 = arith.constant 0 : index
    %c0_6 = arith.constant 0 : index
    %10 = vector.load %arg3[%c0_5, %c0_6] : memref<2x8xf32, #tpu.memory_space<vmem>>, vector<2x8xf32>
    %11 = arith.addf %9, %10 : vector<2x8xf32>
    %c0_7 = arith.constant 0 : index
    %c0_8 = arith.constant 0 : index
    %12 = vector.load %arg6[%c0_7, %c0_8] : memref<2x1xf32, #tpu.memory_space<vmem>>, vector<2x1xf32>
    %cst_9 = arith.constant dense<0xFF800000> : vector<2xf32>
    %13 = vector.multi_reduction <maximumf>, %11, %cst_9 [1] : vector<2x8xf32> to vector<2xf32>
    %14 = vector.shape_cast %13 : vector<2xf32> to vector<2x1xf32>
    %15 = arith.maximumf %12, %14 : vector<2x1xf32>
    %16 = arith.subf %12, %15 : vector<2x1xf32>
    %17 = math.exp %16 : vector<2x1xf32>
    %18 = vector.broadcast %15 : vector<2x1xf32> to vector<2x8xf32>
    %19 = arith.subf %11, %18 : vector<2x8xf32>
    %20 = math.exp %19 : vector<2x8xf32>
    %c0_10 = arith.constant 0 : index
    %c0_11 = arith.constant 0 : index
    %21 = vector.load %arg7[%c0_10, %c0_11] : memref<2x1xf32, #tpu.memory_space<vmem>>, vector<2x1xf32>
    %22 = arith.mulf %17, %21 : vector<2x1xf32>
    %cst_12 = arith.constant dense<0.000000e+00> : vector<2xf32>
    %23 = vector.multi_reduction <add>, %20, %cst_12 [1] : vector<2x8xf32> to vector<2xf32>
    %24 = vector.shape_cast %23 : vector<2xf32> to vector<2x1xf32>
    %25 = arith.addf %22, %24 : vector<2x1xf32>
    %c0_13 = arith.constant 0 : index
    %c0_14 = arith.constant 0 : index
    %26 = vector.load %arg7[%c0_13, %c0_14] : memref<2x1xf32, #tpu.memory_space<vmem>>, vector<2x1xf32>
    tpu.vector_store %arg7[%c0_13, %c0_14], %25 {strides = array<i32>} : memref<2x1xf32, #tpu.memory_space<vmem>>, vector<2x1xf32>,
    %27 = vector.shape_cast %20 : vector<2x8xf32> to vector<2x1x8xf32>
    "tpu.trace_start"() <{level = 10 : i32, message = "nqt,nth->nqh"}> : () -> ()
    %cst_15 = arith.constant dense<0.000000e+00> : vector<2x1x32xf32>
    %28 = tpu.matmul %27, %3, %cst_15 {dimension_numbers = #tpu.dot_dimension_numbers<[2], [1], [1], [2], [0, 0, 0, 1, 1, 2], [0], [0]>} : vector<2x1x8xf32>, vector<2x8x32xf32>, vector<2x1x32xf32> -> vector<2x1x32xf32>
    "tpu.trace_stop"() : () -> ()
    %29 = vector.shape_cast %28 : vector<2x1x32xf32> to vector<2x32xf32>
    %c0_16 = arith.constant 0 : index
    %c0_17 = arith.constant 0 : index
    %30 = vector.load %arg8[%c0_16, %c0_17] : memref<2x32xf32, #tpu.memory_space<vmem>>, vector<2x32xf32>
    %31 = vector.broadcast %17 : vector<2x1xf32> to vector<2x32xf32>
    %32 = arith.mulf %31, %30 : vector<2x32xf32>
    %33 = arith.addf %32, %29 : vector<2x32xf32>
    %c0_18 = arith.constant 0 : index
    %c0_19 = arith.constant 0 : index
    %34 = vector.load %arg8[%c0_18, %c0_19] : memref<2x32xf32, #tpu.memory_space<vmem>>, vector<2x32xf32>
    tpu.vector_store %arg8[%c0_18, %c0_19], %33 {strides = array<i32>} : memref<2x32xf32, #tpu.memory_space<vmem>>, vector<2x32xf32>,
    %c0_20 = arith.constant 0 : index
    %c0_21 = arith.constant 0 : index
    %35 = vector.load %arg6[%c0_20, %c0_21] : memref<2x1xf32, #tpu.memory_space<vmem>>, vector<2x1xf32>
    tpu.vector_store %arg6[%c0_20, %c0_21], %15 {strides = array<i32>} : memref<2x1xf32, #tpu.memory_space<vmem>>, vector<2x1xf32>,
    %c0_i32_22 = arith.constant 0 : i32
    %36 = arith.cmpi eq, %arg1, %c0_i32_22 : i32
    %37 = arith.extui %36 : i1 to i32
    %c0_i32_23 = arith.constant 0 : i32
    %38 = arith.cmpi ne, %37, %c0_i32_23 : i32
    scf.if %38 {
      %c0_24 = arith.constant 0 : index
      %c0_25 = arith.constant 0 : index
      %39 = vector.load %arg8[%c0_24, %c0_25] : memref<2x32xf32, #tpu.memory_space<vmem>>, vector<2x32xf32>
      %c0_26 = arith.constant 0 : index
      %c0_27 = arith.constant 0 : index
      %40 = vector.load %arg7[%c0_26, %c0_27] : memref<2x1xf32, #tpu.memory_space<vmem>>, vector<2x1xf32>
      %41 = vector.broadcast %40 : vector<2x1xf32> to vector<2x32xf32>
      %42 = arith.divf %39, %41 : vector<2x32xf32>
      %c0_28 = arith.constant 0 : index
      %c0_29 = arith.constant 0 : index
      %43 = vector.load %arg5[%c0_28, %c0_29] : memref<2x32xf32, #tpu.memory_space<vmem>>, vector<2x32xf32>
      tpu.vector_store %arg5[%c0_28, %c0_29], %42 {strides = array<i32>} : memref<2x32xf32, #tpu.memory_space<vmem>>, vector<2x32xf32>,
    } else {
    }
    return
  }
  func.func @transform_0(%arg0: i32, %arg1: i32) -> (i32, i32, i32) {
    %c0_i32 = arith.constant 0 : i32
    %c0_i32_0 = arith.constant 0 : i32
    return %arg0, %arg1, %c0_i32 : i32, i32, i32
  }
  func.func @transform_1(%arg0: i32, %arg1: i32) -> (i32, i32) {
    %c0_i32 = arith.constant 0 : i32
    return %arg0, %arg1 : i32, i32
  }
  func.func @transform_2(%arg0: i32, %arg1: i32) -> (i32, i32) {
    %c0_i32 = arith.constant 0 : i32
    %c0_i32_0 = arith.constant 0 : i32
    %c0_i32_1 = arith.constant 0 : i32
    return %c0_i32, %c0_i32_0 : i32, i32
  }
  func.func @transform_3(%arg0: i32, %arg1: i32) -> (i32, i32) {
    %c0_i32 = arith.constant 0 : i32
    %c0_i32_0 = arith.constant 0 : i32
    return %arg0, %c0_i32 : i32, i32
  }
}

</mosaic_0001>

<bundles_post_ra>
// kernel: tpu_custom_call.1
= control target key start
LH: loop header
LB: loop body
LE: loop exit
PB: predicated region body
PF: predicated region fallthrough
CT: control target
= control target key end

     0   :  { %8 = vsyncpa [#allocation6], 0  ;;  %s612_s0 = inlined_call_operand.hbm [shape: f32[2,8,32], index: 0, kind: input, shape index: {}]   ;;  %s613_s1 = inlined_call_operand.vmem [shape: f32[2,8], index: 1, kind: input, shape index: {}]   ;;  %s614_s2 = inlined_call_operand.vmem [shape: f32[1,32], index: 2, kind: input, shape index: {}]   ;;  %s615_s3 = inlined_call_operand.hbm [shape: f32[2,32], index: 3, kind: output, shape index: {}]  }
   0x1   :  { %9 = vsyncpa [#allocation7], 0  ;;  %s528_s12 = smov [#allocation5]   ;;  %s480_s16 = scalar_lea.hbm %s612_s0, 256 }
   0x2   :  { %s15_s13 = sshll.u32 %s528_s12, 4  ;;  %p481_p0 = scmp.ne.s32.totalorder %s612_s0, %s480_s16  ;;  %s16_s13 = int_to_ptr.vmem [resolvable:$true] %s15_s13 }
   0x3   :  { %p484_p1 = scmp.lt.u32.totalorder %s480_s16, %s612_s0 }
   0x5   :  { %p486_p2 = pnand %p484_p1, %p481_p0 }
   0x7   :  { %489 = shalt.err (!%p486_p2)
}
   0x8   :  { %s490_s21 = scalar_lea.vmem %s16_s13, 256  ;;  %p495_p4 = scmp.lt.s32.totalorder %s16_s13, %s16_s13 }
   0x9   :  { %p491_p3 = scmp.ne.s32.totalorder %s16_s13, %s490_s21  ;;  %p496_p5 = scmp.lt.s32.totalorder %s490_s21, %s490_s21 }
   0xb   :  { %p497_p6 = por %p496_p5, %p495_p4 }
   0xd   :  { %p498_p7 = pnand %p497_p6, %p491_p3 }
   0xf   :  { %501 = shalt.err (!%p498_p7)
}
  0x10   :  { %s529_s22 = smov 128   ;;  %s530_s23 = smov 8  }
  0x11   :  { %21 = dma.hbm_to_vmem [thread:$0]  %s612_s0, 256, %s16_s13, [#allocation6], %s529_s22, %s529_s22, %s530_s23  }
  0x12   :  { %524 = dma.done.wait [#allocation6], 256  }
  0x13   :  { %525 = vsyncadd [#allocation6], 4294967040  ;;  %v531_v0 = vmov 0.0   ;;  %vm532_vm0 = vmmov 0   ;;  %vm41_vm1 = vcmask 261120   ;;  %v39_v1 = vld [vmem:[#allocation5 + $0x8] sm:$0xff] }
  0x14   :  { %447 = vmatprep.subr.mxu1 %v531_v0  ;;  %442 = vmatprep.subr.mxu0 %v531_v0  ;;  %v38_v2 = vld [vmem:[#allocation5] sm:$0xff]  ;;  %v40_v3 = vld [vmem:[%s614_s2] sm:$0x1]  ;;  %vm33_vm2 = vcmask 1024   ;;  %v533_v4 = vmov -inf   ;;  %vm202_vm3 = vcmask 1041409  }
  0x15   :  { %449 = vmatprep.mubr.msk.f32.mxu1 %vm532_vm0, %v531_v0  ;;  %444 = vmatprep.mubr.msk.f32.mxu0 %vm532_vm0, %v531_v0  ;;  %34 = vst.msk [vmem:[#allocation2] sm:$0x3] %vm33_vm2, %v533_v4  ;;  %35 = vst.msk [vmem:[#allocation3] sm:$0x3] %vm33_vm2, %v531_v0  ;;  %v191_v5 = vld [vmem:[%s613_s1] sm:$0x3] }
  0x16   :  { %448 = vmatpush3.xpose.msk.msra.mxu1 %vm41_vm1, %v39_v1  ;;  %443 = vmatpush3.xpose.msk.msra.mxu0 %vm41_vm1, %v38_v2  ;;  %v193_v6 = vrot.slane %v191_v5, 1  ;;  %vm205_vm4 = vcmask 58368   ;;  %v534_v16 = vmov 0   ;;  %vm239_vm5 = vcmask 64512   ;;  %s535_s1 = smov [#allocation8]  }
  0x17   :  { %452 = vmatprep.subr.mxu0 %v531_v0  ;;  %457 = vmatprep.subr.mxu1 %v531_v0  ;;  %vm36_vm6 = vcmask 254976   ;;  %s419_s28 = sshll.u32 %s535_s1, 4  ;;  %s420_s28 = int_to_ptr.vmem [resolvable:$true] %s419_s28 }
  0x18   :  { %470 = vset.pattern.permute.xlu0 %v534_v16  ;;  %471 = vset.pattern.permute.xlu1 %v534_v16  ;;  %37 = vst.msk [vmem:[#allocation4] sm:$0x3] %vm36_vm6, %v531_v0  ;;  %s502_s29 = scalar_lea.vmem %s420_s28, 32  ;;  %p507_p9 = scmp.lt.s32.totalorder %s420_s28, %s420_s28 }
  0x19   :  { %450 = vmatmul.mubr.msk.f32.vlgmr.msra.gmra.mrb[0].mxu1 %vm41_vm1, %v40_v3  ;;  %445 = vmatmul.mubr.msk.f32.vlgmr.msra.gmra.mrb[0].mxu0 %vm41_vm1, %v40_v3  ;;  %p503_p8 = scmp.ne.s32.totalorder %s420_s28, %s502_s29  ;;  %p508_p10 = scmp.lt.s32.totalorder %s502_s29, %s502_s29 }
  0x1a   :  { %453 = vmatpush3.msra.mxu0 %v38_v2  ;;  %454 = vmatprep.mubr.msk.f32.mxu0 %vm532_vm0, %v531_v0 }
  0x1b   :  { %458 = vmatpush3.msra.mxu1 %v39_v1  ;;  %459 = vmatprep.mubr.msk.f32.mxu1 %vm532_vm0, %v531_v0  ;;  %p509_p11 = por %p508_p10, %p507_p9 }
  0x1c   :  { %v198_v17 = vld [vmem:[#allocation2] sm:$0x3]  ;;  %v226_v34 = vld [vmem:[#allocation3] sm:$0x3] }
  0x1d   :  { %p510_p12 = pnand %p509_p11, %p503_p8 }
  0x1f   :  { %v384_v40 = vld [vmem:[#allocation4] sm:$0x3] }
  0xec   :  { %v187_v7 = vpop.f32.mrb[0].mxu1  ;;  %v114_v8 = vpop.f32.mrb[0].mxu0 }
  0xed   :  { %v197_v9 = vadd.f32 %v193_v6, %v187_v7  ;;  %v196_v10 = vadd.f32 %v191_v5, %v114_v8  ;;  %v451_v11 = vpop.f32.mrb[1].mxu1  ;;  %v446_v12 = vpop.f32.mrb[1].mxu0 }
  0xef   :  { %v201_v13 = vrot.slane %v197_v9, 7 }
  0xf1   :  { %v203_v14 = vsel %vm202_vm3, %v201_v13, %v196_v10 }
  0xf2   :  { %v206_v15 = vsel %vm205_vm4, %v203_v14, -inf }
  0xf3   :  { %207 = vmax.xlane.f32.xlu0 %v206_v15 }
 0x180   :  { %v208_v18 = vpop.xlane.xlu0 %207 }
 0x181   :  { %v209_v19 = vmax.f32 %v198_v17, %v208_v18 }
 0x183   :  { %v210_v20 = vsub.f32 %v198_v17, %v209_v19  ;;  %399 = vst.msk [vmem:[#allocation2] sm:$0x3] %vm33_vm2, %v209_v19  ;;  %215 = vperm.xlu0 %470, %v209_v19  }
 0x185   :  { %v211_v32 = vmul.f32 1.442695, %v210_v20 }
 0x202   :  { %v216_v21 = vpop.permute.xlu0 %215 }
 0x203   :  { %v217_v22 = vrot.slane %v216_v21, 1  ;;  %v220_v23 = vsub.f32 %v196_v10, %v216_v21 }
 0x205   :  { %v221_v24 = vsub.f32 %v197_v9, %v217_v22  ;;  %v222_v25 = vmul.f32 1.442695, %v220_v23 }
 0x207   :  { %472 = vpow2.f32 %v222_v25  ;;  %v224_v26 = vmul.f32 1.442695, %v221_v24 }
 0x209   :  { %474 = vpow2.f32 %v224_v26 }
 0x20a   :  { %476 = vpow2.f32 %v211_v32 }
 0x211   :  { %v473_v27 = vpop.eup %472 }
 0x212   :  { %455 = vmatmul.mubr.msk.f32.vlgmr.msra.gmra.mrb[2].mxu0 %vm239_vm5, %v473_v27 }
 0x213   :  { %v475_v28 = vpop.eup %474 }
 0x214   :  { %460 = vmatmul.mubr.msk.f32.vlgmr.msra.gmra.mrb[2].mxu1 %vm239_vm5, %v475_v28  ;;  %v230_v29 = vrot.slane %v475_v28, 7  ;;  %v477_v33 = vpop.eup %476 }
 0x215   :  { %v227_v35 = vmul.f32 %v477_v33, %v226_v34 }
 0x216   :  { %v231_v30 = vsel %vm202_vm3, %v230_v29, %v473_v27 }
 0x217   :  { %v233_v31 = vsel %vm205_vm4, %v231_v30, 0.0 }
 0x218   :  { %234 = vadd.xlane.f32.xlu1 %v233_v31 }
 0x229   :  { %387 = vperm.xlu1 %471, %v477_v33  }
 0x2a5   :  { %v235_v36 = vpop.xlane.xlu1 %234 }
 0x2a6   :  { %v236_v37 = vadd.f32 %v235_v36, %v227_v35 }
 0x2a8   :  { %238 = vst.msk [vmem:[#allocation3] sm:$0x3] %vm33_vm2, %v236_v37 }
 0x2a9   :  { %v388_v41 = vpop.permute.xlu1 %387 }
 0x2aa   :  { %v390_v46 = vmul.f32 %v388_v41, %v384_v40 }
 0x2af   :  { %v404_v38 = vld [vmem:[#allocation3] sm:$0x3] }
 0x2b0   :  { %407 = vperm.xlu1 %471, %v404_v38  }
 0x2e5   :  { %v308_v39 = vpop.f32.mrb[2].mxu0 }
 0x2e6   :  { %v456_v42 = vpop.f32.mrb[3].mxu0 }
 0x2e7   :  { %v380_v43 = vpop.f32.mrb[2].mxu1 }
 0x2e8   :  { %v393_v44 = vrot.slane %v380_v43, 7  ;;  %v461_v45 = vpop.f32.mrb[3].mxu1 }
 0x2ea   :  { %v394_v47 = vsel %vm202_vm3, %v393_v44, %v308_v39 }
 0x2eb   :  { %v396_v48 = vadd.f32 %v394_v47, %v390_v46 }
 0x2ed   :  { %398 = vst.msk [vmem:[#allocation4] sm:$0x3] %vm36_vm6, %v396_v48 }
 0x2f4   :  { %v403_v51 = vld [vmem:[#allocation4] sm:$0x3] }
 0x32f   :  { %v408_v49 = vpop.permute.xlu1 %407 }
 0x330   :  { %478 = vrcp.f32 %v408_v49 }
 0x33a   :  { %v479_v50 = vpop.eup %478 }
 0x33b   :  { %v411_v52 = vmul.f32 %v479_v50, %v403_v51 }
 0x33d   :  { %412 = vst.msk [vmem:[#allocation8] sm:$0x3] %vm36_vm6, %v411_v52 }
 0x33e   :  { %513 = shalt.err (!%p510_p12)
}
 0x33f   :  { %s514_s5 = scalar_lea.hbm %s615_s3, 32 }
 0x340   :  { %p515_p13 = scmp.ne.s32.totalorder %s615_s3, %s514_s5  ;;  %p518_p0 = scmp.lt.u32.totalorder %s514_s5, %s615_s3 }
 0x342   :  { %p520_p1 = pnand %p518_p0, %p515_p13 }
 0x344   :  { %523 = shalt.err (!%p520_p1)
}
 0x345   :  { %422 = dma.vmem_to_hbm [thread:$0]  %s420_s28, 32, %s615_s3, [#allocation7]  }
 0x346   :  { %526 = dma.done.wait [#allocation7], 32  }
 0x347   :  { %527 = vsyncadd [#allocation7], 4294967264 }
 0x348   :  { %426 = vsyncpa [#allocation6], 1 }
 0x349   :  { %427 = vsyncpa [#allocation7], 1 }

</bundles_post_ra>
